<compile_context>
chip_gen: v7x
topology: tpu7x:2x2x1
jax: 0.10.0
libtpu: 0.0.40
codegen_flags: <defaults>
</compile_context>

<pallas_src>
import jax
import jax.numpy as jnp
from jax.experimental import pallas as pl
from jax.experimental.pallas import tpu as pltpu


def _downsample_gemm_kernel(p_ref, w_ref, b_ref, o_ref):
    # p_ref: (1, K, TM)   patch tile (M on lanes -> lane-dense loads)
    # w_ref: (Cout, K)    resident weight
    # b_ref: (Cout, 1)    resident bias
    # o_ref: (1, Cout, TM) lane-dense output tile
    acc = jnp.dot(w_ref[...], p_ref[0], preferred_element_type=jnp.float32)
    o_ref[0] = (acc + b_ref[...]).astype(o_ref.dtype)


def downsample_forward(x, weight, bias, downsample_factor,
                       *, vmem_budget_bytes=8 * 1024 * 1024):
    """x: (B, Cin, D, H, W) float32.
    weight: (Cout, Cin, fd, fh, fw)  (PyTorch Conv3d layout).
    bias: (Cout,).
    Returns (B, Cout, D//fd, H//fh, W//fw).
    """
    fd, fh, fw = downsample_factor
    B, Cin, D, H, W = x.shape
    Cout = weight.shape[0]
    # Stride == kernel, padding 0: spatial dims must be exact multiples.
    assert D % fd == 0 and H % fh == 0 and W % fw == 0, (
        "spatial dims must be exact multiples of downsample_factor")
    Do, Ho, Wo = D // fd, H // fh, W // fw
    K = Cin * fd * fh * fw
    Mo = Do * Ho * Wo

    # --- glue: patchify. Single data-moving transpose in HBM; everything
    # downstream (weight reshape, output reshape) is free / lane-dense.
    xp = x.reshape(B, Cin, Do, fd, Ho, fh, Wo, fw)
    xp = xp.transpose(0, 1, 3, 5, 7, 2, 4, 6)   # (B, Cin, fd, fh, fw, Do, Ho, Wo)
    patches = xp.reshape(B, K, Mo)              # M (patch index) on the lane axis

    # (Cout, Cin, fd, fh, fw) flattens directly to (Cout, K) with the same
    # K ordering as `patches` -- no transpose, no data movement.
    w_mat = weight.reshape(Cout, K)
    b_mat = bias.reshape(Cout, 1)

    # --- M-tile size: largest lane-dense tile whose double-buffered
    # input + output columns (plus resident weight/bias) fit the budget.
    bytes_per_col = 2 * (K + Cout) * 4          # 2x buffered patch + out column (f32)
    resident = 2 * (K * Cout + Cout) * 4        # weight + bias
    tm_cap = max(128, ((vmem_budget_bytes - resident) // bytes_per_col) // 128 * 128)
    TM = Mo if Mo <= tm_cap else tm_cap
    grid = (B, pl.cdiv(Mo, TM))

    out_flat = pl.pallas_call(
        _downsample_gemm_kernel,
        out_shape=jax.ShapeDtypeStruct((B, Cout, Mo), x.dtype),
        grid_spec=pltpu.PrefetchScalarGridSpec(
            num_scalar_prefetch=0,
            grid=grid,
            in_specs=[
                pl.BlockSpec((1, K, TM), lambda b, m: (b, 0, m)),
                pl.BlockSpec((Cout, K), lambda b, m: (0, 0)),   # resident weight
                pl.BlockSpec((Cout, 1), lambda b, m: (0, 0)),   # resident bias
            ],
            out_specs=pl.BlockSpec((1, Cout, TM), lambda b, m: (b, 0, m)),
        ),
        compiler_params=pltpu.CompilerParams(
            dimension_semantics=("parallel", "parallel")),
        cost_estimate=pl.CostEstimate(
            flops=2 * B * Mo * K * Cout,
            transcendentals=0,
            bytes_accessed=(B * K * Mo + K * Cout + Cout + B * Cout * Mo) * 4),
    )(patches, w_mat, b_mat)

    # (B, Cout, Do*Ho*Wo) -> (B, Cout, Do, Ho, Wo): pure reshape, no transpose.
    return out_flat.reshape(B, Cout, Do, Ho, Wo)


def reference_conv3d(x, weight, bias, downsample_factor):
    """Plain-JAX reference using lax.conv_general_dilated (NCDHW / OIDHW)."""
    fd, fh, fw = downsample_factor
    out = jax.lax.conv_general_dilated(
        x, weight,
        window_strides=(fd, fh, fw),
        padding="VALID",
        dimension_numbers=("NCDHW", "OIDHW", "NCDHW"),
    )
    return out + bias.reshape(1, -1, 1, 1, 1)


if __name__ == "__main__":
    key = jax.random.PRNGKey(0)
    k_x, k_w, k_b = jax.random.split(key, 3)

    B, Cin, Cout = 2, 4, 8
    D = H = W = 8
    downsample_factor = (2, 2, 2)
    fd, fh, fw = downsample_factor

    x = jax.random.normal(k_x, (B, Cin, D, H, W), dtype=jnp.float32)
    weight = jax.random.normal(k_w, (Cout, Cin, fd, fh, fw), dtype=jnp.float32) * 0.1
    bias = jax.random.normal(k_b, (Cout,), dtype=jnp.float32) * 0.1

    out = downsample_forward(x, weight, bias, downsample_factor)
    out = jax.block_until_ready(out)

    ref = jax.block_until_ready(
        reference_conv3d(x, weight, bias, downsample_factor))

    assert out.shape == (B, Cout, D // fd, H // fh, W // fw), out.shape
    assert jnp.allclose(out, ref, atol=1e-4, rtol=1e-4), \
        float(jnp.max(jnp.abs(out - ref)))

    print("KERNEL_OK")
</pallas_src>

<mosaic_0001>
module attributes {stable_mosaic.version = 11 : i64} {
  func.func @_downsample_gemm_kernel(%arg0: i32, %arg1: i32, %arg2: memref<1x32x64xf32, #tpu.memory_space<vmem>>, %arg3: memref<8x32xf32, #tpu.memory_space<vmem>>, %arg4: memref<8x1xf32, #tpu.memory_space<vmem>>, %arg5: memref<1x8x64xf32, #tpu.memory_space<vmem>>) attributes {dimension_semantics = [#tpu.dimension_semantics<parallel>, #tpu.dimension_semantics<parallel>], iteration_bounds = array<i64: 2, 1>, scalar_prefetch = 0 : i64, scratch_operands = 0 : i64, tpu.core_type = #tpu.core_type<tc>, window_params = [{transform_indices = @transform_0, window_bounds = array<i64: 1, 32, 64>}, {pipeline_mode = #tpu.pipeline_mode<synchronous>, transform_indices = @transform_1, window_bounds = array<i64: 8, 32>}, {pipeline_mode = #tpu.pipeline_mode<synchronous>, transform_indices = @transform_2, window_bounds = array<i64: 8, 1>}, {transform_indices = @transform_3, window_bounds = array<i64: 1, 8, 64>}]} {
    %c0 = arith.constant 0 : index
    %c0_0 = arith.constant 0 : index
    %0 = vector.load %arg3[%c0, %c0_0] : memref<8x32xf32, #tpu.memory_space<vmem>>, vector<8x32xf32>
    %c0_1 = arith.constant 0 : index
    %c0_2 = arith.constant 0 : index
    %c0_3 = arith.constant 0 : index
    %1 = vector.load %arg2[%c0_1, %c0_2, %c0_3] : memref<1x32x64xf32, #tpu.memory_space<vmem>>, vector<1x32x64xf32>
    %2 = vector.shape_cast %1 : vector<1x32x64xf32> to vector<32x64xf32>
    %cst = arith.constant dense<0.000000e+00> : vector<8x64xf32>
    %3 = tpu.matmul %0, %2, %cst {dimension_numbers = #tpu.dot_dimension_numbers<[1], [0], [0], [1], [0, 0, 1, 1], [], []>} : vector<8x32xf32>, vector<32x64xf32>, vector<8x64xf32> -> vector<8x64xf32>
    %c0_4 = arith.constant 0 : index
    %c0_5 = arith.constant 0 : index
    %4 = vector.load %arg4[%c0_4, %c0_5] : memref<8x1xf32, #tpu.memory_space<vmem>>, vector<8x1xf32>
    %5 = vector.broadcast %4 : vector<8x1xf32> to vector<8x64xf32>
    %6 = arith.addf %3, %5 : vector<8x64xf32>
    %c0_6 = arith.constant 0 : index
    %c0_7 = arith.constant 0 : index
    %c0_8 = arith.constant 0 : index
    %7 = vector.load %arg5[%c0_6, %c0_7, %c0_8] : memref<1x8x64xf32, #tpu.memory_space<vmem>>, vector<1x8x64xf32>
    %8 = vector.shape_cast %7 : vector<1x8x64xf32> to vector<8x64xf32>
    %9 = vector.shape_cast %6 : vector<8x64xf32> to vector<1x8x64xf32>
    tpu.vector_store %arg5[%c0_6, %c0_7, %c0_8], %9 {strides = array<i32>} : memref<1x8x64xf32, #tpu.memory_space<vmem>>, vector<1x8x64xf32>,
    return
  }
  func.func @transform_0(%arg0: i32, %arg1: i32) -> (i32, i32, i32) {
    %c0_i32 = arith.constant 0 : i32
    %c0_i32_0 = arith.constant 0 : i32
    return %arg0, %c0_i32, %arg1 : i32, i32, i32
  }
  func.func @transform_1(%arg0: i32, %arg1: i32) -> (i32, i32) {
    %c0_i32 = arith.constant 0 : i32
    %c0_i32_0 = arith.constant 0 : i32
    %c0_i32_1 = arith.constant 0 : i32
    return %c0_i32, %c0_i32_0 : i32, i32
  }
  func.func @transform_2(%arg0: i32, %arg1: i32) -> (i32, i32) {
    %c0_i32 = arith.constant 0 : i32
    %c0_i32_0 = arith.constant 0 : i32
    %c0_i32_1 = arith.constant 0 : i32
    return %c0_i32, %c0_i32_0 : i32, i32
  }
  func.func @transform_3(%arg0: i32, %arg1: i32) -> (i32, i32, i32) {
    %c0_i32 = arith.constant 0 : i32
    %c0_i32_0 = arith.constant 0 : i32
    return %arg0, %c0_i32, %arg1 : i32, i32, i32
  }
}

</mosaic_0001>

<bundles_post_ra>
// kernel: tpu_custom_call.1
= control target key start
LH: loop header
LB: loop body
LE: loop exit
PB: predicated region body
PF: predicated region fallthrough
CT: control target
= control target key end

     0   :  { %8 = vsyncpa [#allocation3], 0  ;;  %s818_s0 = inlined_call_operand.hbm [shape: f32[2,32,64], index: 0, kind: input, shape index: {}]   ;;  %s819_s1 = inlined_call_operand.vmem [shape: f32[8,32], index: 1, kind: input, shape index: {}]   ;;  %s820_s2 = inlined_call_operand.vmem [shape: f32[8,1], index: 2, kind: input, shape index: {}]   ;;  %s821_s3 = inlined_call_operand.hbm [shape: f32[2,8,64], index: 3, kind: output, shape index: {}]  }
   0x1   :  { %10 = vsyncpa [#allocation3 + $0x1], 0 }
   0x2   :  { %11 = vsyncpa [#allocation4], 0 }
   0x3   :  { %13 = vsyncpa [#allocation4 + $0x1], 0  ;;  %s638_s12 = smov 0   ;;  %s640_s13 = smov 0  }
   0x4   :  { %s642_s14 = smov 0   ;;  %s644_s15 = smov 0  }
   0x5   :  { %s646_s16 = smov 0   ;;  %s648_s17 = smov 0  }
   0x6 LB: > { %s389_s18 = sadd.s32 4294967295, %s608_s17   ;;  %s390_s19 = sadd.s32 4294967294, %s608_s17   ;;  %s608_s17 = sphi %s648_s17, %s19_s17   ;;  %s604_s16 = sphi %s646_s16, %s836_s16   ;;  %s600_s15 = sphi %s644_s15, %s835_s15   ;;  %s596_s14 = sphi %s642_s14, %s834_s14   ;;  %s592_s13 = sphi %s640_s13, %s833_s13   ;;  %s588_s12 = sphi %s638_s12, %s832_s12  }
   0x7   : > { %s31_s20 = sadd.s32 1, %s604_s16  ;;  %s40_s21 = sadd.s32 1, %s596_s14 }
   0x8   : > { %p33_p0 = scmp.ge.s32.totalorder %s31_s20, 2  ;;  %p47_p1 = scmp.ne.s32.totalorder %s596_s14, %s592_s13 }
   0x9   : > { %p48_p2 = scmp.eq.s32.totalorder %s608_s17, 0  ;;  %p53_p3 = scmp.ne.s32.totalorder %s592_s13, %s588_s12 }
   0xa   : > { %s838_s20 = smov (%p33_p0, %s31_s20), 0  ;;  %p54_p5 = scmp.eq.s32.totalorder %s389_s18, 0 }
   0xb   : > { %p679_p4 = por %p48_p2, %p47_p1  ;;  %s35_s23 = ssub.s32 %s604_s16, %s838_s20 }
   0xc   : > { %p121_p6 = scmp.eq.s32.totalorder %s389_s18, 1  ;;  %p38_p7 = scmp.eq.s32.totalorder %s35_s23, 0 }
   0xd   : > { %p685_p8 = por %p54_p5, %p53_p3  ;;  %p127_p10 = scmp.eq.s32.totalorder %s390_s19, 1 }
   0xe   : > { %p689_p9 = por %p121_p6, %p47_p1  ;;  %p439_p13 = scmp.lt.s32.totalorder %s608_s17, 2 }
   0xf   : > { %s694_s26 = scalar_select %p38_p7, %s596_s14, %s40_s21  }
  0x10   : > { %s825_s25 = scalar_select %p689_p9, 1, 0 }
  0x11   : > { %p696_p11 = por %p127_p10, %p53_p3  ;;  %s153_s28 = sand.u32 1, %s596_s14  }
  0x12   : > { %s393_s29 = sshll.u32 %s153_s28, 5  ;;  %s404_s30 = sshll.u32 %s604_s16, 9 }
  0x13   : > { %s826_s27 = scalar_select %p696_p11, 1, 0 }
  0x14   : > { %s707_s6 = scalar_lea.hbm %s818_s0, %s404_s30  ;;  %s157_s7 = scalar_lea.vmem [#allocation2], %s393_s29 }
  0x15   : > { %s165_s8 = sshll.u32 %s157_s7, 4  ;;  %p713_p0 = pnand %p439_p13, %p679_p4  ;;  %s709_s8 = int_to_ptr.vmem [resolvable:$true] %s165_s8 }
  0x16   : > { %s718_s10 = scalar_lea.sflag [#allocation3], %s153_s28  ;;  %s496_s11 = scalar_lea.hbm %s707_s6, 512 }
  0x17   : > { %p497_p2 = scmp.ne.s32.totalorder %s707_s6, %s496_s11  ;;  %p498_p3 = pneg %p713_p0 }
  0x18   : > { %s501_s21 = scalar_lea.hbm %s818_s0, 1024  ;;  %p502_p4 = scmp.lt.u32.totalorder %s707_s6, %s818_s0 }
  0x19   : > { %p499_p5 = pnand %p498_p3, %p497_p2  ;;  %p503_p7 = scmp.lt.u32.totalorder %s501_s21, %s496_s11 }
  0x1a   : > { %p505_p13 = scmp.lt.u32.totalorder %s496_s11, %s707_s6 }
  0x1b   : > { %p500_p6 = pneg %p499_p5  ;;  %p504_p10 = por %p503_p7, %p502_p4 }
  0x1d   : > { %p506_p12 = por %p505_p13, %p504_p10 }
  0x1f   : > { %p507_p1 = pnand %p506_p12, %p500_p6 }
  0x21   : > { %510 = shalt.err (!%p507_p1)
}
  0x22   : > { %s511_s28 = scalar_lea.vmem %s709_s8, 512  ;;  %s610_s29 = smov [#allocation2]  }
  0x23   : > { %p512_p2 = scmp.ne.s32.totalorder %s709_s8, %s511_s28  ;;  %s516_s30 = sshll.u32 %s610_s29, 4  ;;  %s517_s30 = int_to_ptr.vmem [resolvable:$false] %s516_s30 }
  0x24   : > { %s518_s4 = scalar_lea.vmem %s517_s30, 1024  ;;  %p519_p9 = scmp.lt.s32.totalorder %s709_s8, %s517_s30 }
  0x25   : > { %p514_p5 = pnand %p512_p2, %p498_p3  ;;  %p520_p4 = scmp.lt.s32.totalorder %s518_s4, %s511_s28 }
  0x27   : > { %p515_p11 = pneg %p514_p5  ;;  %p521_p7 = por %p520_p4, %p519_p9 }
  0x29   : > { %p522_p10 = pnand %p521_p7, %p515_p11 }
  0x2b   : > { %525 = shalt.err (!%p522_p10)
}
  0x2c   : > { %s611_s5 = smov 128   ;;  %s612_s7 = smov 8  }
  0x2d   : > { %434 = dma.hbm_to_vmem [thread:$0]  (!%p713_p0), %s707_s6, 512, %s709_s8, %s718_s10, %s611_s5, %s611_s5, %s612_s7  }
  0x2e   : > { %p173_p12 = scmp.lt.s32.totalorder %s608_s17, 3  ;;  %p828_p1 = scmp.ge.s32.totalorder %s608_s17, 1 }
  0x30   : > { %p174_p3 = pnand %p828_p1, %p173_p12 }
  0x31   : > { %s750_s11 = sand.u32 (!%p174_p3), 1, %s592_s13  }
  0x32   : > { %177 = sbr.rel (%p174_p3) target bundleno = 297 (0x129), region = 32  ;;  %s397_s18 = sshll.u32 (!%p174_p3), %s750_s11, 5 }
  0x33   : > { %s180_s19 = scalar_lea.sflag (!%p174_p3), [#allocation3], %s750_s11  ;;  %s183_s21 = scalar_lea.vmem (!%p174_p3), [#allocation2], %s397_s18 }
  0x39   : > { %579 = dma.done.wait (%p685_p8), %s180_s19, 512  }
  0x3a   : > { %581 = vsyncadd (%p685_p8), %s180_s19, 4294966784  ;;  %v613_v0 = vmov 0.0|0.0   ;;  %vm614_vm0 = vmmov 0   ;;  %v615_v1 = vmov 0.0   ;;  %v616_v2 = vmov 0   ;;  %v207_v3 = vld [vmem:[%s183_s21] sm:$0xff] }
  0x3b   : > { %421 = vmatprep.subr.bf16.mxu0 %v613_v0  ;;  %418 = vmatprep.mubr.msk.f32.mxu0 %vm614_vm0, %v615_v1  ;;  %v208_v4 = vld [vmem:[%s183_s21 + $0x8] sm:$0xff]  ;;  %v209_v5 = vld [vmem:[%s183_s21 + $0x10] sm:$0xff]  ;;  %v210_v7 = vld [vmem:[%s183_s21 + $0x18] sm:$0xff]  ;;  %vm217_vm1 = vcmask 261120   ;;  %s398_s10 = sshll.u32 %s750_s11, 3  ;;  %s401_s22 = sshll.u32 %s600_s15, 7 }
  0x3c   : > { %495 = vset.pattern.permute.xlu0 %v616_v2  ;;  %v422_v6 = vpack.c.bf16 %v208_v4, %v207_v3  ;;  %v211_v8 = vld [vmem:[%s820_s2] sm:$0xff]  ;;  %v425_v9 = vpack.c.bf16 %v210_v7, %v209_v5  ;;  %s205_s23 = scalar_lea.vmem [#allocation5], %s398_s10  ;;  %vm291_vm2 = vcmask 523264   ;;  %s769_s4 = scalar_lea.hbm %s821_s3, %s401_s22 }
  0x3d   : > { %214 = vperm.xlu0 %495, %v211_v8   ;;  %v206_v10 = vld [vmem:[%s819_s1] sm:$0xff]  ;;  %s308_s28 = sshll.u32 %s205_s23, 4  ;;  %s294_s5 = scalar_lea.sflag [#allocation4], %s750_s11  ;;  %s771_s28 = int_to_ptr.vmem [resolvable:$true] %s308_s28 }
  0x3e   : > { %423 = vmatpush3.bf16.msra.mxu0 %v422_v6  ;;  %s526_s7 = scalar_lea.vmem %s771_s28, 128  ;;  %p829_p9 = scmp.ne.s32.totalorder %s825_s25, 0 }
  0x3f   : > { %424 = vmatprep.subr.bf16.mxu0 %v613_v0  ;;  %p527_p8 = scmp.ne.s32.totalorder %s771_s28, %s526_s7  ;;  %s617_s15 = smov [#allocation5]  }
  0x40   : > { %s530_s18 = sshll.u32 %s617_s15, 4  ;;  %s531_s18 = int_to_ptr.vmem [resolvable:$false] %s530_s18 }
  0x41   : > { %p528_p11 = pnand %p527_p8, %p829_p9  ;;  %s532_s19 = scalar_lea.vmem %s531_s18, 256 }
  0x42   : > { %426 = vmatpush3.bf16.msra.mxu0 %v425_v9  ;;  %p533_p6 = scmp.lt.s32.totalorder %s771_s28, %s531_s18  ;;  %p534_p13 = scmp.lt.s32.totalorder %s532_s19, %s526_s7 }
  0x43   : > { %p529_p0 = pneg %p528_p11 }
  0x44   : > { %p535_p2 = por %p534_p13, %p533_p6 }
  0x45   : > { %419 = vmatmul.mubr.msk.f32.vlgmr.msra.gmra.mrb[0].mxu0 %vm217_vm1, %v206_v10 }
  0x46   : > { %p536_p5 = pnand %p535_p2, %p529_p0 }
  0xbc   : > { %v215_v11 = vpop.permute.xlu0 %214 }
 0x118   : > { %v287_v12 = vpop.f32.mrb[0].mxu0 }
 0x119   : > { %v288_v13 = vadd.f32 %v287_v12, %v215_v11  ;;  %v420_v14 = vpop.f32.mrb[1].mxu0 }
 0x11b   : > { %292 = vst.msk [vmem:[%s205_s23] sm:$0xff] %vm291_vm2, %v288_v13 }
 0x11c   : > { %539 = shalt.err (!%p536_p5)
}
 0x11d   : > { %s540_s11 = scalar_lea.hbm %s769_s4, 128  ;;  %s544_s8 = scalar_lea.hbm %s821_s3, 256 }
 0x11e   : > { %p541_p4 = scmp.ne.s32.totalorder %s769_s4, %s540_s11  ;;  %p545_p12 = scmp.lt.u32.totalorder %s769_s4, %s821_s3 }
 0x11f   : > { %p546_p1 = scmp.lt.u32.totalorder %s544_s8, %s540_s11  ;;  %p548_p8 = scmp.lt.u32.totalorder %s540_s11, %s769_s4 }
 0x120   : > { %p542_p7 = pnand %p541_p4, %p829_p9 }
 0x121   : > { %p547_p3 = por %p546_p1, %p545_p12 }
 0x122   : > { %p543_p10 = pneg %p542_p7 }
 0x123   : > { %p549_p11 = por %p548_p8, %p547_p3 }
 0x125   : > { %p550_p0 = pnand %p549_p11, %p543_p10 }
 0x127   : > { %553 = shalt.err (!%p550_p0)
}
 0x128   : > { %429 = dma.vmem_to_hbm [thread:$0]  (%p829_p9), %s771_s28, 128, %s769_s4, %s294_s5  }
 0x129 PF: > { %s320_s10 = sand.u32 1, %s588_s12   ;;  %p830_p6 = scmp.ne.s32.totalorder %s826_s27, 0 }
 0x12a   : > { %p831_p13 = scmp.ge.s32.totalorder %s608_s17, 2  ;;  %s321_s22 = scalar_lea.sflag [#allocation4], %s320_s10 }
 0x12c   : > { %p436_p2 = pnand %p831_p13, %p830_p6 }
 0x12e   : > { %583 = dma.done.wait (!%p436_p2), %s321_s22, 128  }
 0x12f   : > { %585 = vsyncadd (!%p436_p2), %s321_s22, 4294967168  ;;  %s19_s17 = sadd.s32 1, %s608_s17   ;;  %s832_s12 = smov %s592_s13 }
 0x130   : > { %p16_p5 = scmp.ge.s32.totalorder %s19_s17, 4   ;;  %s833_s13 = smov %s596_s14 }
 0x131   : > { %s834_s14 = smov %s694_s26  ;;  %s835_s15 = smov %s604_s16 }
 0x132   : > { %s836_s16 = smov %s838_s20  ;;  %18 = sbr.rel (!%p16_p5) target bundleno = 6 (0x6), region = 77 }
 0x139   :  { %326 = vsyncpa [#allocation3], 1 }
 0x13a   :  { %328 = vsyncpa [#allocation3 + $0x1], 1 }
 0x13b   :  { %329 = vsyncpa [#allocation4], 1 }
 0x13c   :  { %331 = vsyncpa [#allocation4 + $0x1], 1 }

</bundles_post_ra>
